<compile_context>
chip_gen: v7x
topology: tpu7x:2x2x1
jax: 0.10.0
libtpu: 0.0.40
codegen_flags: <defaults>
</compile_context>

<pallas_src>
import functools
import math

import jax
import jax.numpy as jnp
from jax import lax
from jax.experimental import pallas as pl
from jax.experimental.pallas import tpu as pltpu


def _iou_sums_kernel(x_ref, t_ref, inter_out, st_out, inter_acc, st_acc, *,
                     apply_sigmoid, hw, tile, acc_w, needs_mask, unroll,
                     static_unroll_max):
    """Grid = (batch_blocks, hw_tiles); hw_tiles is the (arbitrary) reduction axis.

    Emits per physical row:  inter = sum(x*t),  st = sum(x) + sum(t).
    """
    k = pl.program_id(1)
    nk = pl.num_programs(1)

    @pl.when(k == 0)
    def _():
        inter_acc[...] = jnp.zeros_like(inter_acc)
        st_acc[...] = jnp.zeros_like(st_acc)

    bb = x_ref.shape[0]
    n_wide = tile // acc_w
    left = tile - n_wide * acc_w          # only non-zero in the single-tile case
    n_128 = left // 128
    rem = left - n_128 * 128
    base = k * tile                       # global column offset of this tile

    def loaded(off, width, masked):
        xs = x_ref[:, pl.ds(off, width)].astype(jnp.float32)
        ts = t_ref[:, pl.ds(off, width)].astype(jnp.float32)
        if apply_sigmoid:
            xs = jax.nn.sigmoid(xs)
        if masked:
            # True select: garbage (possibly NaN/Inf) in the padded region never
            # reaches the sums.  Do NOT turn this into multiply-by-mask.
            lane = lax.broadcasted_iota(jnp.int32, (bb, width), 1)
            valid = (base + off + lane) < hw
            xs = jnp.where(valid, xs, 0.0)
            ts = jnp.where(valid, ts, 0.0)
        return xs, ts

    def accumulate(masked):
        inter = inter_acc[...]
        st = st_acc[...]

        def wide_update(off, i_, s_):
            xs, ts = loaded(off, acc_w, masked)
            return i_ + xs * ts, s_ + (xs + ts)

        if n_wide > 0:
            if n_wide <= static_unroll_max:
                for c in range(n_wide):               # static, fully unrolled
                    inter, st = wide_update(c * acc_w, inter, st)
            else:
                def body(c, carry):
                    i_, s_ = carry
                    off = pl.multiple_of(c * acc_w, acc_w)
                    return wide_update(off, i_, s_)
                inter, st = lax.fori_loop(0, n_wide, body, (inter, st),
                                          unroll=unroll)
        inter_acc[...] = inter
        st_acc[...] = st

        # Narrow leftovers (< acc_w; only possible when the whole HW extent is a
        # single tile).  Cross-lane reduce straight into column 0 — runs at most
        # a handful of times per kernel invocation.
        off0 = n_wide * acc_w
        narrow = [(off0 + c * 128, 128) for c in range(n_128)]
        if rem:
            narrow.append((off0 + n_128 * 128, rem))
        for off_c, w in narrow:
            xs, ts = loaded(off_c, w, masked)
            inter_acc[:, 0:1] = inter_acc[:, 0:1] + jnp.sum(xs * ts, axis=1,
                                                            keepdims=True)
            st_acc[:, 0:1] = st_acc[:, 0:1] + jnp.sum(xs + ts, axis=1,
                                                      keepdims=True)

    if needs_mask:
        # Masking only matters on the last HW tile — full tiles run unmasked.
        @pl.when(k < nk - 1)
        def _():
            accumulate(False)

        @pl.when(k == nk - 1)
        def _():
            accumulate(True)
    else:
        accumulate(False)

    @pl.when(k == nk - 1)
    def _():
        inter_out[...] = jnp.sum(inter_acc[...], axis=1, keepdims=True)
        st_out[...] = jnp.sum(st_acc[...], axis=1, keepdims=True)


def _make_in_spec(bb, tile, buffers):
    idx = lambda b, k: (b, k)
    if buffers > 2 and hasattr(pl, "Buffered"):
        try:
            return pl.BlockSpec((bb, tile), idx, pipeline_mode=pl.Buffered(buffers))
        except TypeError:
            pass
    return pl.BlockSpec((bb, tile), idx)


def iou_loss(inp, target, smooth=1.0, *, activation_sigmoid=False,
             reduction="none", target_block_bytes=None):
    """Pallas IoU loss.  inp/target: (B, ...spatial).  Returns (B,) for reduction='none'."""
    assert inp.shape == target.shape
    B = inp.shape[0]
    hw = math.prod(inp.shape[1:])
    x = inp.reshape(B, hw)
    t = target.reshape(B, hw)              # keep producer dtype (bf16 accepted as-is)

    itemsize = jnp.dtype(x.dtype).itemsize
    sub = {4: 8, 2: 16, 1: 32}.get(itemsize, 8)   # min sublane tile for the dtype

    # ---- generation-aware VMEM budget ------------------------------------
    budget_default, vmem_cap = 4 << 20, 30 << 20        # safe fallback (v7x-like)
    try:
        phys = pltpu.get_tpu_info().vmem_capacity_bytes
        if phys >= (100 << 20):                          # v5e / v6e: 128 MiB VMEM
            budget_default, vmem_cap = 8 << 20, 56 << 20
        else:                                            # v7x: 64 MiB VMEM
            budget_default, vmem_cap = 4 << 20, 30 << 20
    except Exception:
        pass
    budget = budget_default if target_block_bytes is None else int(target_block_bytes)
    budget = min(budget, max(1 << 16, (vmem_cap - (4 << 20)) // 6))

    # ---- sublane fill for small batches: (B, hw) -> (B*S, hw/S) ------------
    S = 1
    if B < sub:
        cand = sub // math.gcd(B, sub)     # smallest S making B*S a multiple of sub
        while cand > 1:
            if hw % cand == 0:
                S = cand
                break
            cand //= 2
    R = B * S
    hw_eff = hw // S
    if S > 1:
        x = x.reshape(R, hw_eff)           # row-major contiguous -> free reshape
        t = t.reshape(R, hw_eff)

    # ---- rows per batch block (bounded vreg pressure, megacore split) ------
    cap = 64 if itemsize >= 4 else (128 if itemsize == 2 else 256)
    if R <= sub:
        Bb = R
    else:
        m = max(sub, min(cap, (R // sub) * sub))
        Bb = m
        c = m
        while c >= sub:
            if R % c == 0:
                Bb = c
                break
            c -= sub
        if Bb == R and R % 2 == 0 and (R // 2) % sub == 0 and (R // 2) <= cap:
            Bb = R // 2                    # two batch blocks for v7x's 2 TCs
    nb = pl.cdiv(R, Bb)

    # ---- HW tile + accumulator width ---------------------------------------
    pref = 512 if Bb <= 16 else (256 if Bb <= 32 else 128)
    tile_lanes = max(128, (budget // (Bb * itemsize)) // 128 * 128)
    if tile_lanes >= hw_eff:
        tile = hw_eff                      # full lane extent is always a legal block
    else:
        tile = tile_lanes
        if tile >= pref:
            tile = (tile // pref) * pref   # clean wide-chunk inner loop
    n_tiles = pl.cdiv(hw_eff, tile)
    needs_mask = (n_tiles * tile != hw_eff)
    acc_w = min(pref, max(128, (tile // 128) * 128))

    total_steps = nb * n_tiles
    buffers = 3 if total_steps >= 3 else 2

    kernel = functools.partial(
        _iou_sums_kernel,
        apply_sigmoid=bool(activation_sigmoid),
        hw=hw_eff, tile=tile, acc_w=acc_w, needs_mask=needs_mask,
        unroll=8, static_unroll_max=16)

    block_bytes = Bb * tile * itemsize
    vmem_need = 2 * buffers * block_bytes + 2 * Bb * acc_w * 4 + (2 << 20)
    vmem_limit = int(min(max(vmem_need, 16 << 20), vmem_cap))

    out_spec = pl.BlockSpec((Bb, 1), lambda b, k: (b, 0))
    inter_rows, st_rows = pl.pallas_call(
        kernel,
        out_shape=(jax.ShapeDtypeStruct((R, 1), jnp.float32),
                   jax.ShapeDtypeStruct((R, 1), jnp.float32)),
        grid_spec=pltpu.PrefetchScalarGridSpec(
            num_scalar_prefetch=0,
            grid=(nb, n_tiles),
            in_specs=[
                _make_in_spec(Bb, tile, buffers),
                _make_in_spec(Bb, tile, buffers),
            ],
            out_specs=[out_spec, out_spec],
            scratch_shapes=[
                pltpu.VMEM((Bb, acc_w), jnp.float32),   # intersection accumulator
                pltpu.VMEM((Bb, acc_w), jnp.float32),   # sum(x) + sum(t) accumulator
            ],
        ),
        compiler_params=pltpu.CompilerParams(
            dimension_semantics=("parallel", "arbitrary"),
            vmem_limit_bytes=vmem_limit,
        ),
    )(x, t)

    # Fold the S sublane-fill partials, then the (tiny) IoU formula.
    inter = inter_rows[:, 0].reshape(B, S).sum(axis=1)
    st = st_rows[:, 0].reshape(B, S).sum(axis=1)
    smooth_f = jnp.float32(smooth)
    iou = (inter + smooth_f) / (st - inter + smooth_f)
    loss = 1.0 - iou

    if reduction == "sum":
        return jnp.sum(loss)
    if reduction == "mean":
        return jnp.mean(loss)
    return loss


def _iou_loss_ref(inp, target, smooth=1.0, sigmoid=False):
    B = inp.shape[0]
    x = inp.reshape(B, -1).astype(jnp.float32)
    if sigmoid:
        x = jax.nn.sigmoid(x)
    t = target.reshape(B, -1).astype(jnp.float32)
    inter = jnp.sum(x * t, axis=1)
    iou = (inter + smooth) / (jnp.sum(x, axis=1) + jnp.sum(t, axis=1) - inter + smooth)
    return 1.0 - iou


if __name__ == "__main__":
    key = jax.random.PRNGKey(0)

    def check(shape, *, sigmoid=False, target_block_bytes=None, seed_offset=0):
        k1, k2 = jax.random.split(jax.random.fold_in(key, seed_offset))
        if sigmoid:
            inp = jax.random.normal(k1, shape, dtype=jnp.float32)   # logits
        else:
            inp = jax.random.uniform(k1, shape, dtype=jnp.float32)  # probs
        tgt = (jax.random.uniform(k2, shape) > 0.5).astype(jnp.float32)
        got = iou_loss(inp, tgt, smooth=1.0, activation_sigmoid=sigmoid,
                       target_block_bytes=target_block_bytes)
        got = jax.block_until_ready(got)
        want = _iou_loss_ref(inp, tgt, smooth=1.0, sigmoid=sigmoid)
        assert got.shape == (shape[0],), (got.shape, shape)
        assert jnp.allclose(got, want, atol=1e-5, rtol=1e-5), (got, want)

    # 1) basic case: B=2 -> sublane fill S=4, single narrow tile
    check((2, 16, 16))
    # 2) sigmoid activation path
    check((2, 16, 16), sigmoid=True, seed_offset=1)
    # 3) forced multi-tile with a ragged tail (last-tile-only masking path)
    check((4, 16, 33), target_block_bytes=2048, seed_offset=2)
    check((4, 16, 33), sigmoid=True, target_block_bytes=2048, seed_offset=3)
    # 4) batch split path (two batch blocks) + sub-128 remainder chunk
    check((16, 8, 8), seed_offset=4)
    # 5) wide-accumulator chunked path (acc_w = 512, several wide chunks)
    check((2, 8, 768), seed_offset=5)
    # 6) odd batch -> deeper sublane fill (S=8)
    check((3, 16, 16), seed_offset=6)

    # reductions
    k1, k2 = jax.random.split(jax.random.fold_in(key, 7))
    inp = jax.random.uniform(k1, (2, 16, 16), dtype=jnp.float32)
    tgt = (jax.random.uniform(k2, (2, 16, 16)) > 0.5).astype(jnp.float32)
    ref = _iou_loss_ref(inp, tgt, 1.0)
    assert jnp.allclose(jax.block_until_ready(iou_loss(inp, tgt, reduction="sum")),
                        jnp.sum(ref), atol=1e-5, rtol=1e-5)
    assert jnp.allclose(jax.block_until_ready(iou_loss(inp, tgt, reduction="mean")),
                        jnp.mean(ref), atol=1e-5, rtol=1e-5)

    print("KERNEL_OK")
</pallas_src>

<mosaic_0001>
module attributes {stable_mosaic.version = 11 : i64} {
  func.func @_iou_sums_kernel(%arg0: i32, %arg1: i32, %arg2: memref<8x64xf32, #tpu.memory_space<vmem>>, %arg3: memref<8x64xf32, #tpu.memory_space<vmem>>, %arg4: memref<8x1xf32, #tpu.memory_space<vmem>>, %arg5: memref<8x1xf32, #tpu.memory_space<vmem>>, %arg6: memref<8x128xf32, #tpu.memory_space<vmem>>, %arg7: memref<8x128xf32, #tpu.memory_space<vmem>>) attributes {dimension_semantics = [#tpu.dimension_semantics<parallel>, #tpu.dimension_semantics<arbitrary>], iteration_bounds = array<i64: 1, 1>, scalar_prefetch = 0 : i64, scratch_operands = 2 : i64, tpu.core_type = #tpu.core_type<tc>, window_params = [{transform_indices = @transform_0, window_bounds = array<i64: 8, 64>}, {transform_indices = @transform_1, window_bounds = array<i64: 8, 64>}, {transform_indices = @transform_2, window_bounds = array<i64: 8, 1>}, {transform_indices = @transform_3, window_bounds = array<i64: 8, 1>}]} {
    %c0_i32 = arith.constant 0 : i32
    %0 = arith.cmpi eq, %arg1, %c0_i32 : i32
    %1 = arith.extui %0 : i1 to i32
    %c0_i32_0 = arith.constant 0 : i32
    %2 = arith.cmpi ne, %1, %c0_i32_0 : i32
    scf.if %2 {
      %cst_23 = arith.constant 0.000000e+00 : f32
      %24 = vector.broadcast %cst_23 : f32 to vector<8x128xf32>
      %c0_24 = arith.constant 0 : index
      %c0_25 = arith.constant 0 : index
      %25 = vector.load %arg6[%c0_24, %c0_25] : memref<8x128xf32, #tpu.memory_space<vmem>>, vector<8x128xf32>
      tpu.vector_store %arg6[%c0_24, %c0_25], %24 {strides = array<i32>} : memref<8x128xf32, #tpu.memory_space<vmem>>, vector<8x128xf32>,
      %cst_26 = arith.constant 0.000000e+00 : f32
      %26 = vector.broadcast %cst_26 : f32 to vector<8x128xf32>
      %c0_27 = arith.constant 0 : index
      %c0_28 = arith.constant 0 : index
      %27 = vector.load %arg7[%c0_27, %c0_28] : memref<8x128xf32, #tpu.memory_space<vmem>>, vector<8x128xf32>
      tpu.vector_store %arg7[%c0_27, %c0_28], %26 {strides = array<i32>} : memref<8x128xf32, #tpu.memory_space<vmem>>, vector<8x128xf32>,
    } else {
    }
    %c0 = arith.constant 0 : index
    %c0_1 = arith.constant 0 : index
    %3 = vector.load %arg6[%c0, %c0_1] : memref<8x128xf32, #tpu.memory_space<vmem>>, vector<8x128xf32>
    %c0_2 = arith.constant 0 : index
    %c0_3 = arith.constant 0 : index
    %4 = vector.load %arg7[%c0_2, %c0_3] : memref<8x128xf32, #tpu.memory_space<vmem>>, vector<8x128xf32>
    %c0_4 = arith.constant 0 : index
    %c0_5 = arith.constant 0 : index
    %5 = vector.load %arg6[%c0_4, %c0_5] : memref<8x128xf32, #tpu.memory_space<vmem>>, vector<8x128xf32>
    tpu.vector_store %arg6[%c0_4, %c0_5], %3 {strides = array<i32>} : memref<8x128xf32, #tpu.memory_space<vmem>>, vector<8x128xf32>,
    %c0_6 = arith.constant 0 : index
    %c0_7 = arith.constant 0 : index
    %6 = vector.load %arg7[%c0_6, %c0_7] : memref<8x128xf32, #tpu.memory_space<vmem>>, vector<8x128xf32>
    tpu.vector_store %arg7[%c0_6, %c0_7], %4 {strides = array<i32>} : memref<8x128xf32, #tpu.memory_space<vmem>>, vector<8x128xf32>,
    %c0_8 = arith.constant 0 : index
    %c0_9 = arith.constant 0 : index
    %7 = vector.load %arg2[%c0_8, %c0_9] : memref<8x64xf32, #tpu.memory_space<vmem>>, vector<8x64xf32>
    %c0_10 = arith.constant 0 : index
    %c0_11 = arith.constant 0 : index
    %8 = vector.load %arg3[%c0_10, %c0_11] : memref<8x64xf32, #tpu.memory_space<vmem>>, vector<8x64xf32>
    %c0_12 = arith.constant 0 : index
    %c0_13 = arith.constant 0 : index
    %9 = vector.load %arg6[%c0_12, %c0_13] : memref<8x128xf32, #tpu.memory_space<vmem>>, vector<8x1xf32>
    %10 = arith.mulf %7, %8 : vector<8x64xf32>
    %cst = arith.constant dense<0.000000e+00> : vector<8xf32>
    %11 = vector.multi_reduction <add>, %10, %cst [1] : vector<8x64xf32> to vector<8xf32>
    %12 = vector.shape_cast %11 : vector<8xf32> to vector<8x1xf32>
    %13 = arith.addf %9, %12 : vector<8x1xf32>
    %c0_14 = arith.constant 0 : index
    %c0_15 = arith.constant 0 : index
    %14 = vector.load %arg6[%c0_14, %c0_15] : memref<8x128xf32, #tpu.memory_space<vmem>>, vector<8x1xf32>
    tpu.vector_store %arg6[%c0_14, %c0_15], %13 {strides = array<i32>} : memref<8x128xf32, #tpu.memory_space<vmem>>, vector<8x1xf32>,
    %c0_16 = arith.constant 0 : index
    %c0_17 = arith.constant 0 : index
    %15 = vector.load %arg7[%c0_16, %c0_17] : memref<8x128xf32, #tpu.memory_space<vmem>>, vector<8x1xf32>
    %16 = arith.addf %7, %8 : vector<8x64xf32>
    %cst_18 = arith.constant dense<0.000000e+00> : vector<8xf32>
    %17 = vector.multi_reduction <add>, %16, %cst_18 [1] : vector<8x64xf32> to vector<8xf32>
    %18 = vector.shape_cast %17 : vector<8xf32> to vector<8x1xf32>
    %19 = arith.addf %15, %18 : vector<8x1xf32>
    %c0_19 = arith.constant 0 : index
    %c0_20 = arith.constant 0 : index
    %20 = vector.load %arg7[%c0_19, %c0_20] : memref<8x128xf32, #tpu.memory_space<vmem>>, vector<8x1xf32>
    tpu.vector_store %arg7[%c0_19, %c0_20], %19 {strides = array<i32>} : memref<8x128xf32, #tpu.memory_space<vmem>>, vector<8x1xf32>,
    %c0_i32_21 = arith.constant 0 : i32
    %21 = arith.cmpi eq, %arg1, %c0_i32_21 : i32
    %22 = arith.extui %21 : i1 to i32
    %c0_i32_22 = arith.constant 0 : i32
    %23 = arith.cmpi ne, %22, %c0_i32_22 : i32
    scf.if %23 {
      %c0_23 = arith.constant 0 : index
      %c0_24 = arith.constant 0 : index
      %24 = vector.load %arg6[%c0_23, %c0_24] : memref<8x128xf32, #tpu.memory_space<vmem>>, vector<8x128xf32>
      %cst_25 = arith.constant dense<0.000000e+00> : vector<8xf32>
      %25 = vector.multi_reduction <add>, %24, %cst_25 [1] : vector<8x128xf32> to vector<8xf32>
      %26 = vector.shape_cast %25 : vector<8xf32> to vector<8x1xf32>
      %c0_26 = arith.constant 0 : index
      %c0_27 = arith.constant 0 : index
      %27 = vector.load %arg4[%c0_26, %c0_27] : memref<8x1xf32, #tpu.memory_space<vmem>>, vector<8x1xf32>
      tpu.vector_store %arg4[%c0_26, %c0_27], %26 {strides = array<i32>} : memref<8x1xf32, #tpu.memory_space<vmem>>, vector<8x1xf32>,
      %c0_28 = arith.constant 0 : index
      %c0_29 = arith.constant 0 : index
      %28 = vector.load %arg7[%c0_28, %c0_29] : memref<8x128xf32, #tpu.memory_space<vmem>>, vector<8x128xf32>
      %cst_30 = arith.constant dense<0.000000e+00> : vector<8xf32>
      %29 = vector.multi_reduction <add>, %28, %cst_30 [1] : vector<8x128xf32> to vector<8xf32>
      %30 = vector.shape_cast %29 : vector<8xf32> to vector<8x1xf32>
      %c0_31 = arith.constant 0 : index
      %c0_32 = arith.constant 0 : index
      %31 = vector.load %arg5[%c0_31, %c0_32] : memref<8x1xf32, #tpu.memory_space<vmem>>, vector<8x1xf32>
      tpu.vector_store %arg5[%c0_31, %c0_32], %30 {strides = array<i32>} : memref<8x1xf32, #tpu.memory_space<vmem>>, vector<8x1xf32>,
    } else {
    }
    return
  }
  func.func @transform_0(%arg0: i32, %arg1: i32) -> (i32, i32) {
    %c0_i32 = arith.constant 0 : i32
    return %arg0, %arg1 : i32, i32
  }
  func.func @transform_1(%arg0: i32, %arg1: i32) -> (i32, i32) {
    %c0_i32 = arith.constant 0 : i32
    return %arg0, %arg1 : i32, i32
  }
  func.func @transform_2(%arg0: i32, %arg1: i32) -> (i32, i32) {
    %c0_i32 = arith.constant 0 : i32
    %c0_i32_0 = arith.constant 0 : i32
    return %arg0, %c0_i32 : i32, i32
  }
  func.func @transform_3(%arg0: i32, %arg1: i32) -> (i32, i32) {
    %c0_i32 = arith.constant 0 : i32
    %c0_i32_0 = arith.constant 0 : i32
    return %arg0, %c0_i32 : i32, i32
  }
}

</mosaic_0001>

<bundles_post_ra>
// kernel: tpu_custom_call.1
= control target key start
LH: loop header
LB: loop body
LE: loop exit
PB: predicated region body
PF: predicated region fallthrough
CT: control target
= control target key end

     0   :  { %9 = vsyncpa [#allocation5], 0  ;;  %s190_s0 = inlined_call_operand.hbm [shape: f32[8,64], index: 0, kind: input, shape index: {}]   ;;  %s191_s1 = inlined_call_operand.hbm [shape: f32[8,64], index: 1, kind: input, shape index: {}]   ;;  %s192_s2 = inlined_call_operand.vmem [shape: f32[8,1], index: 2, kind: output, shape index: {0}]   ;;  %s193_s3 = inlined_call_operand.vmem [shape: f32[8,1], index: 3, kind: output, shape index: {1}]  }
   0x1   :  { %10 = vsyncpa [#allocation7], 0  ;;  %s137_s12 = smov [#allocation4]   ;;  %s138_s14 = smov [#allocation6]  }
   0x2   :  { %s17_s13 = sshll.u32 %s137_s12, 4  ;;  %s27_s15 = sshll.u32 %s138_s14, 4  ;;  %s18_s13 = int_to_ptr.vmem [resolvable:$true] %s17_s13  ;;  %s28_s15 = int_to_ptr.vmem [resolvable:$true] %s27_s15 }
   0x3   :  { %s89_s18 = scalar_lea.hbm %s190_s0, 128 }
   0x4   :  { %p90_p0 = scmp.ne.s32.totalorder %s190_s0, %s89_s18  ;;  %p93_p1 = scmp.lt.u32.totalorder %s89_s18, %s190_s0 }
   0x6   :  { %p95_p2 = pnand %p93_p1, %p90_p0 }
   0x8   :  { %98 = shalt.err (!%p95_p2)
}
   0x9   :  { %s99_s23 = scalar_lea.vmem %s18_s13, 128  ;;  %p104_p4 = scmp.lt.s32.totalorder %s18_s13, %s18_s13 }
   0xa   :  { %p100_p3 = scmp.ne.s32.totalorder %s18_s13, %s99_s23  ;;  %p105_p5 = scmp.lt.s32.totalorder %s99_s23, %s99_s23 }
   0xc   :  { %p106_p6 = por %p105_p5, %p104_p4 }
   0xe   :  { %p107_p7 = pnand %p106_p6, %p100_p3 }
  0x10   :  { %110 = shalt.err (!%p107_p7)
}
  0x11   :  { %20 = dma.hbm_to_vmem [thread:$0]  %s190_s0, 128, %s18_s13, [#allocation5]  }
  0x12   :  { %s111_s28 = scalar_lea.hbm %s191_s1, 128 }
  0x13   :  { %p112_p8 = scmp.ne.s32.totalorder %s191_s1, %s111_s28  ;;  %p115_p9 = scmp.lt.u32.totalorder %s111_s28, %s191_s1 }
  0x15   :  { %p117_p10 = pnand %p115_p9, %p112_p8 }
  0x17   :  { %120 = shalt.err (!%p117_p10)
}
  0x18   :  { %s121_s6 = scalar_lea.vmem %s28_s15, 128  ;;  %p126_p12 = scmp.lt.s32.totalorder %s28_s15, %s28_s15 }
  0x19   :  { %p122_p11 = scmp.ne.s32.totalorder %s28_s15, %s121_s6  ;;  %p127_p13 = scmp.lt.s32.totalorder %s121_s6, %s121_s6 }
  0x1b   :  { %p128_p0 = por %p127_p13, %p126_p12 }
  0x1d   :  { %p129_p1 = pnand %p128_p0, %p122_p11 }
  0x1f   :  { %132 = shalt.err (!%p129_p1)
}
  0x20   :  { %30 = dma.hbm_to_vmem [thread:$0]  %s191_s1, 128, %s28_s15, [#allocation7]  }
  0x21   :  { %133 = dma.done.wait [#allocation5], 128  }
  0x22   :  { %134 = vsyncadd [#allocation5], 4294967168 }
  0x23   :  { %135 = dma.done.wait [#allocation7], 128  }
  0x24   :  { %136 = vsyncadd [#allocation7], 4294967168  ;;  %v139_v0 = vmov 0.0   ;;  %v47_v1 = vld [vmem:[#allocation4] sm:$0xff]  ;;  %v48_v2 = vld [vmem:[#allocation6] sm:$0xff]  ;;  %vm51_vm0 = vcmask 523264  }
  0x25   :  { %45 = vst [vmem:[#allocation2] sm:$0xff] %v139_v0  ;;  %46 = vst [vmem:[#allocation3] sm:$0xff] %v139_v0  ;;  %v50_v3 = vmul.f32 %v48_v2, %v47_v1  ;;  %v59_v4 = vadd.f32 %v48_v2, %v47_v1  ;;  %vm56_vm1 = vcmask 7168  }
  0x27   :  { %v52_v5 = vsel %vm51_vm0, %v50_v3, 0.0  ;;  %v60_v6 = vsel %vm51_vm0, %v59_v4, 0.0 }
  0x28   :  { %53 = vadd.xlane.f32.xlu0 %v52_v5 }
  0x2c   :  { %61 = vadd.xlane.f32.xlu0 %v60_v6 }
  0xb5   :  { %v54_v7 = vpop.xlane.xlu0 %53 }
  0xb6   :  { %57 = vst.msk [vmem:[#allocation2] sm:$0xff] %vm56_vm1, %v54_v7 }
  0xb9   :  { %v62_v8 = vpop.xlane.xlu0 %61 }
  0xba   :  { %64 = vst.msk [vmem:[#allocation3] sm:$0xff] %vm56_vm1, %v62_v8 }
  0xbd   :  { %v68_v9 = vld [vmem:[#allocation2] sm:$0xff] }
  0xbe   :  { %69 = vadd.xlane.f32.xlu1 %v68_v9 }
  0xc1   :  { %v72_v10 = vld [vmem:[#allocation3] sm:$0xff] }
  0xc2   :  { %73 = vadd.xlane.f32.xlu1 %v72_v10 }
 0x14b   :  { %v70_v11 = vpop.xlane.xlu1 %69 }
 0x14c   :  { %71 = vst.msk [vmem:[%s192_s2] sm:$0xff] %vm56_vm1, %v70_v11 }
 0x14f   :  { %v74_v12 = vpop.xlane.xlu1 %73 }
 0x150   :  { %75 = vst.msk [vmem:[%s193_s3] sm:$0xff] %vm56_vm1, %v74_v12 }
 0x151   :  { %84 = vsyncpa [#allocation5], 1 }
 0x152   :  { %85 = vsyncpa [#allocation7], 1 }

</bundles_post_ra>
